<compile_context>
chip_gen: v7x
topology: tpu7x:2x2x1
jax: 0.10.0
libtpu: 0.0.40
codegen_flags: <defaults>
</compile_context>

<pallas_src>
import jax
import jax.numpy as jnp
from jax.experimental import pallas as pl
from jax.experimental.pallas import tpu as pltpu


_SQRT_2_OVER_PI = 0.7978845608028654
_GELU_COEF = 0.044715


def _gelu_kernel(x_ref, o_ref):
    # Compute in f32 (safe on v5e which has no bf16 VPU/EUP; on v6e/v7x the
    # kernel is HBM-bound once tiles are lane-dense, so the upcast is free).
    x = x_ref[...].astype(jnp.float32)
    inner = jnp.float32(_SQRT_2_OVER_PI) * (x + jnp.float32(_GELU_COEF) * x * x * x)
    y = jnp.float32(0.5) * x * (jnp.float32(1.0) + jnp.tanh(inner))
    o_ref[...] = y.astype(o_ref.dtype)


def _round_up(n, m):
    return (n + m - 1) // m * m


def _choose_layout(n):
    """Pick a lane-dense (rows, cols) factorization of n (cols multiple of 128).

    Returns (rows, cols, padded_n). padded_n == n unless no multiple-of-128
    divisor of n exists, in which case the flat array is zero-padded.
    """
    # Prefer the widest lane dim that both divides n and leaves >= 8 sublanes.
    for cols in (1024, 512, 256, 128):
        if n % cols == 0 and n // cols >= 8:
            return n // cols, cols, n
    # Next best: any multiple-of-128 divisor at all (tiny inputs).
    for cols in (1024, 512, 256, 128):
        if n % cols == 0:
            return n // cols, cols, n
    # Fallback: zero-pad the flat array up to a multiple of 512 lanes.
    cols = 512
    padded = _round_up(n, cols)
    return padded // cols, cols, padded


def gelu_pallas(x, *, target_block_bytes=2 * 1024 * 1024):
    """Tanh-GELU via a lane-dense, large-tile Pallas TPU kernel."""
    orig_shape = x.shape
    orig_dtype = x.dtype
    n = x.size
    if n == 0:
        return x

    rows, cols, padded_n = _choose_layout(n)
    flat = x.reshape(-1)
    if padded_n != n:
        flat = jnp.pad(flat, (0, padded_n - n))
    x2 = flat.reshape(rows, cols)

    itemsize = jnp.dtype(orig_dtype).itemsize
    # ~2 MiB blocks: large enough to amortize the ~0.35 us per-grid-step
    # overhead and sit at the HBM roofline; double-buffered in+out (~4x tile)
    # stays far below the default scoped VMEM on v5e/v6e/v7x.
    bm = max(8, min(rows, target_block_bytes // (cols * itemsize)))
    bm = min(rows, _round_up(bm, 8))
    # If the input is big enough, keep at least 2 grid steps so v7x's two
    # TensorCores both get work (no-op on v5e/v6e single-TC chips).
    if rows >= 16 and pl.cdiv(rows, bm) < 2:
        bm = max(8, (rows // 2) // 8 * 8)

    grid = (pl.cdiv(rows, bm),)

    out2 = pl.pallas_call(
        _gelu_kernel,
        out_shape=jax.ShapeDtypeStruct((rows, cols), orig_dtype),
        grid=grid,
        in_specs=[pl.BlockSpec((bm, cols), lambda i: (i, 0))],
        out_specs=pl.BlockSpec((bm, cols), lambda i: (i, 0)),
        compiler_params=pltpu.CompilerParams(
            dimension_semantics=("parallel",)
        ),
    )(x2)

    out_flat = out2.reshape(-1)
    if padded_n != n:
        out_flat = out_flat[:n]
    return out_flat.reshape(orig_shape)


def gelu_ref(x):
    xf = x.astype(jnp.float32)
    c = jnp.sqrt(jnp.float32(2.0) / jnp.pi)
    y = 0.5 * xf * (1.0 + jnp.tanh(c * (xf + 0.044715 * xf ** 3)))
    return y.astype(x.dtype)


if __name__ == "__main__":
    key = jax.random.PRNGKey(0)

    # Primary test: NCHW-like input consistent with a generic activation module.
    x = jax.random.normal(key, (2, 4, 16, 16), dtype=jnp.float32)
    y = gelu_pallas(x)
    jax.block_until_ready(y)
    y_ref = gelu_ref(x)
    assert y.shape == x.shape and y.dtype == x.dtype
    assert jnp.allclose(y, y_ref, atol=1e-5, rtol=1e-5)

    # Exercise the multi-block (grid > 1) path.
    k1, k2 = jax.random.split(key)
    x_big = jax.random.normal(k1, (4, 8, 32, 32), dtype=jnp.float32)
    y_big = gelu_pallas(x_big)
    jax.block_until_ready(y_big)
    assert jnp.allclose(y_big, gelu_ref(x_big), atol=1e-5, rtol=1e-5)

    # Exercise the padding fallback (size not a multiple of 128).
    x_odd = jax.random.normal(k2, (3, 5, 7), dtype=jnp.float32)
    y_odd = gelu_pallas(x_odd)
    jax.block_until_ready(y_odd)
    assert y_odd.shape == x_odd.shape
    assert jnp.allclose(y_odd, gelu_ref(x_odd), atol=1e-5, rtol=1e-5)

    print("KERNEL_OK")
</pallas_src>

<mosaic_0001>
module attributes {stable_mosaic.version = 11 : i64} {
  func.func @_gelu_kernel(%arg0: i32, %arg1: memref<8x256xf32, #tpu.memory_space<vmem>>, %arg2: memref<8x256xf32, #tpu.memory_space<vmem>>) attributes {dimension_semantics = [#tpu.dimension_semantics<parallel>], iteration_bounds = array<i64: 1>, scalar_prefetch = 0 : i64, scratch_operands = 0 : i64, tpu.core_type = #tpu.core_type<tc>, window_params = [{transform_indices = @transform_0, window_bounds = array<i64: 8, 256>}, {transform_indices = @transform_1, window_bounds = array<i64: 8, 256>}]} {
    %c0 = arith.constant 0 : index
    %c0_0 = arith.constant 0 : index
    %0 = vector.load %arg1[%c0, %c0_0] : memref<8x256xf32, #tpu.memory_space<vmem>>, vector<8x256xf32>
    %cst = arith.constant 4.471500e-02 : f32
    %1 = vector.broadcast %cst : f32 to vector<8x256xf32>
    %2 = arith.mulf %1, %0 : vector<8x256xf32>
    %3 = arith.mulf %2, %0 : vector<8x256xf32>
    %4 = arith.mulf %3, %0 : vector<8x256xf32>
    %5 = arith.addf %0, %4 : vector<8x256xf32>
    %cst_1 = arith.constant 0.797884583 : f32
    %6 = vector.broadcast %cst_1 : f32 to vector<8x256xf32>
    %7 = arith.mulf %6, %5 : vector<8x256xf32>
    %cst_2 = arith.constant 5.000000e-01 : f32
    %8 = vector.broadcast %cst_2 : f32 to vector<8x256xf32>
    %9 = arith.mulf %8, %0 : vector<8x256xf32>
    %10 = math.tanh %7 : vector<8x256xf32>
    %cst_3 = arith.constant 1.000000e+00 : f32
    %11 = vector.broadcast %cst_3 : f32 to vector<8x256xf32>
    %12 = arith.addf %11, %10 : vector<8x256xf32>
    %13 = arith.mulf %9, %12 : vector<8x256xf32>
    %c0_4 = arith.constant 0 : index
    %c0_5 = arith.constant 0 : index
    %14 = vector.load %arg2[%c0_4, %c0_5] : memref<8x256xf32, #tpu.memory_space<vmem>>, vector<8x256xf32>
    tpu.vector_store %arg2[%c0_4, %c0_5], %13 {strides = array<i32>} : memref<8x256xf32, #tpu.memory_space<vmem>>, vector<8x256xf32>,
    return
  }
  func.func @transform_0(%arg0: i32) -> (i32, i32) {
    %c0_i32 = arith.constant 0 : i32
    %c0_i32_0 = arith.constant 0 : i32
    return %arg0, %c0_i32 : i32, i32
  }
  func.func @transform_1(%arg0: i32) -> (i32, i32) {
    %c0_i32 = arith.constant 0 : i32
    %c0_i32_0 = arith.constant 0 : i32
    return %arg0, %c0_i32 : i32, i32
  }
}

</mosaic_0001>

<bundles_post_ra>
// kernel: tpu_custom_call.1
= control target key start
LH: loop header
LB: loop body
LE: loop exit
PB: predicated region body
PF: predicated region fallthrough
CT: control target
= control target key end

     0   :  { %6 = vsyncpa [#allocation3], 0  ;;  %s148_s0 = inlined_call_operand.hbm [shape: f32[8,256], index: 0, kind: input, shape index: {}]   ;;  %s149_s1 = inlined_call_operand.hbm [shape: f32[8,256], index: 1, kind: output, shape index: {}]  }
   0x1   :  { %7 = vsyncpa [#allocation4], 0  ;;  %s112_s6 = smov [#allocation2]   ;;  %s64_s10 = scalar_lea.hbm %s148_s0, 256 }
   0x2   :  { %s14_s7 = sshll.u32 %s112_s6, 4  ;;  %p65_p0 = scmp.ne.s32.totalorder %s148_s0, %s64_s10  ;;  %s15_s7 = int_to_ptr.vmem [resolvable:$true] %s14_s7 }
   0x3   :  { %p68_p1 = scmp.lt.u32.totalorder %s64_s10, %s148_s0 }
   0x5   :  { %p70_p2 = pnand %p68_p1, %p65_p0 }
   0x7   :  { %73 = shalt.err (!%p70_p2)
}
   0x8   :  { %s74_s15 = scalar_lea.vmem %s15_s7, 256  ;;  %p79_p4 = scmp.lt.s32.totalorder %s15_s7, %s15_s7 }
   0x9   :  { %p75_p3 = scmp.ne.s32.totalorder %s15_s7, %s74_s15  ;;  %p80_p5 = scmp.lt.s32.totalorder %s74_s15, %s74_s15 }
   0xb   :  { %p81_p6 = por %p80_p5, %p79_p4 }
   0xd   :  { %p82_p7 = pnand %p81_p6, %p75_p3 }
   0xf   :  { %85 = shalt.err (!%p82_p7)
}
  0x10   :  { %17 = dma.hbm_to_vmem [thread:$0]  %s148_s0, 256, %s15_s7, [#allocation3]  }
  0x11   :  { %108 = dma.done.wait [#allocation3], 256  }
  0x12   :  { %109 = vsyncadd [#allocation3], 4294967040  ;;  %v21_v0 = vld [vmem:[#allocation2] sm:$0xff]  ;;  %v22_v1 = vld [vmem:[#allocation2 + $0x8] sm:$0xff]  ;;  %s113_s0 = smov [#allocation5]  }
  0x13   :  { %v23_v2 = vmul.f32 0.044715, %v21_v0  ;;  %v24_v3 = vmul.f32 0.044715, %v22_v1  ;;  %v33_v12 = vmul.f32 0.5, %v21_v0  ;;  %v34_v14 = vmul.f32 0.5, %v22_v1 }
  0x14   :  { %s49_s18 = sshll.u32 %s113_s0, 4  ;;  %s50_s18 = int_to_ptr.vmem [resolvable:$true] %s49_s18 }
  0x15   :  { %v25_v4 = vmul.f32 %v23_v2, %v21_v0  ;;  %v26_v5 = vmul.f32 %v24_v3, %v22_v1  ;;  %s86_s19 = scalar_lea.vmem %s50_s18, 256  ;;  %p91_p9 = scmp.lt.s32.totalorder %s50_s18, %s50_s18 }
  0x16   :  { %p87_p8 = scmp.ne.s32.totalorder %s50_s18, %s86_s19  ;;  %p92_p10 = scmp.lt.s32.totalorder %s86_s19, %s86_s19 }
  0x17   :  { %v27_v6 = vmul.f32 %v25_v4, %v21_v0  ;;  %v28_v7 = vmul.f32 %v26_v5, %v22_v1 }
  0x18   :  { %p93_p11 = por %p92_p10, %p91_p9 }
  0x19   :  { %v29_v8 = vadd.f32 %v27_v6, %v21_v0  ;;  %v30_v9 = vadd.f32 %v28_v7, %v22_v1 }
  0x1a   :  { %p94_p12 = pnand %p93_p11, %p87_p8 }
  0x1b   :  { %v31_v10 = vmul.f32 0.7978846, %v29_v8  ;;  %v32_v11 = vmul.f32 0.7978846, %v30_v9 }
  0x1d   :  { %60 = vtanh.f32 %v31_v10 }
  0x1e   :  { %62 = vtanh.f32 %v32_v11 }
  0x27   :  { %v61_v13 = vpop.eup %60 }
  0x28   :  { %v63_v15 = vpop.eup %62  ;;  %v37_v16 = vadd.f32 1.0, %v61_v13 }
  0x29   :  { %v38_v17 = vadd.f32 1.0, %v63_v15 }
  0x2a   :  { %v39_v18 = vmul.f32 %v37_v16, %v33_v12 }
  0x2b   :  { %v40_v19 = vmul.f32 %v38_v17, %v34_v14 }
  0x2c   :  { %41 = vst [vmem:[#allocation5] sm:$0xff] %v39_v18 }
  0x2d   :  { %42 = vst [vmem:[#allocation5 + $0x8] sm:$0xff] %v40_v19 }
  0x2e   :  { %97 = shalt.err (!%p94_p12)
}
  0x2f   :  { %s98_s22 = scalar_lea.hbm %s149_s1, 256 }
  0x30   :  { %p99_p13 = scmp.ne.s32.totalorder %s149_s1, %s98_s22  ;;  %p102_p0 = scmp.lt.u32.totalorder %s98_s22, %s149_s1 }
  0x32   :  { %p104_p1 = pnand %p102_p0, %p99_p13 }
  0x34   :  { %107 = shalt.err (!%p104_p1)
}
  0x35   :  { %52 = dma.vmem_to_hbm [thread:$0]  %s50_s18, 256, %s149_s1, [#allocation4]  }
  0x36   :  { %110 = dma.done.wait [#allocation4], 256  }
  0x37   :  { %111 = vsyncadd [#allocation4], 4294967040 }
  0x38   :  { %56 = vsyncpa [#allocation3], 1 }
  0x39   :  { %57 = vsyncpa [#allocation4], 1 }

</bundles_post_ra>
